<compile_context>
chip_gen: v7x
topology: tpu7x:2x2x1
jax: 0.10.0
libtpu: 0.0.40
codegen_flags: <defaults>
</compile_context>

<pallas_src>
import jax
import jax.numpy as jnp
from jax.experimental import pallas as pl
from jax.experimental.pallas import tpu as pltpu


_TILE_BUDGET_BYTES = 4 * 1024 * 1024     # raw, f32-accounted x tile per buffer
_VMEM_LIMIT_BYTES = 40 * 1024 * 1024     # << 64 MiB v7x physical, > 16 MiB v5e default


def _round_up(v, m):
    return (v + m - 1) // m * m


def _pick_block_b(B, S, D):
    """Batch-tile size from a VMEM budget (f32 + lane/sublane padding)."""
    # Per-row VMEM footprint of the x tile in f32, including the (8, 128)
    # tile padding Mosaic applies to the last two dims.
    bytes_per_row = _round_up(S, 8) * _round_up(D, 128) * 4
    blk = _TILE_BUDGET_BYTES // bytes_per_row
    if blk >= 8:
        blk = (blk // 8) * 8          # keep (blk, D)/(blk, S) blocks 8-aligned
    blk = max(blk, min(8, B))
    # Keep >= ~4 grid steps when B allows it so the "parallel" batch axis can
    # be sharded across both v7x TensorCores and per-step overhead amortizes.
    if B >= 16:
        blk = min(blk, max(8, (B // 4) // 8 * 8))
    return min(blk, B)


def _make_attention_kernel(has_mask):
    def kernel(*refs):
        if has_mask:
            x_ref, w_ref, b_ref, m_ref, out_ref = refs
        else:
            x_ref, w_ref, b_ref, out_ref = refs
            m_ref = None

        # In-kernel cast keeps HBM->VMEM traffic at native width; f32 compute
        # for the VPU/EUP (required on v5e, keeps numerics tight everywhere).
        # The VMEM budget above already accounts for these f32 temporaries.
        x = x_ref[...].astype(jnp.float32)          # (Bblk, S, D)
        w = w_ref[...]                              # (1, D)   f32
        b = b_ref[...]                              # (1, S)   f32

        # Score: lane-axis (D) reduction of a VPU multiply (no MXU).
        eij = jnp.sum(x * w, axis=-1) + b           # (Bblk, S)
        a = jnp.exp(jnp.tanh(eij))                  # EUP ops

        if m_ref is not None:
            a = a * m_ref[...].astype(jnp.float32)

        # Row normalization: EUP reciprocal instead of an S-wide VPU divide;
        # one Newton step restores full f32 accuracy on a tiny (Bblk, 1) slab.
        denom = jnp.sum(a, axis=1, keepdims=True) + 1e-10
        inv = pl.reciprocal(denom, approx=True)
        inv = inv * (2.0 - denom * inv)
        a = a * inv                                 # (Bblk, S)

        # Weighted sum over steps: sublane-axis (S) reduction.
        out = jnp.sum(x * a[:, :, None], axis=1)    # (Bblk, D)
        out_ref[...] = out.astype(out_ref.dtype)

    return kernel


@jax.jit
def attention(x, weight, bias, mask=None):
    """x: (B, S, D) = (batch, step_dim, feature_dim); weight: (D, 1) or (D,);
    bias: (S,); optional mask: (B, S)."""
    B, S, D = x.shape
    # Keep the tiny weight/bias in f32 (matches the PyTorch reference even
    # when x is bf16); their blocks are constant-indexed so they stay resident.
    w_row = weight.reshape(1, D).astype(jnp.float32)
    b_row = bias.reshape(1, S).astype(jnp.float32)

    blk_b = _pick_block_b(B, S, D)
    grid = (pl.cdiv(B, blk_b),)

    in_specs = [
        pl.BlockSpec((blk_b, S, D), lambda i: (i, 0, 0)),   # x tile
        pl.BlockSpec((1, D), lambda i: (0, 0)),             # weight (resident)
        pl.BlockSpec((1, S), lambda i: (0, 0)),             # bias   (resident)
    ]
    args = [x, w_row, b_row]
    if mask is not None:
        in_specs.append(pl.BlockSpec((blk_b, S), lambda i: (i, 0)))
        args.append(mask.astype(jnp.float32))

    return pl.pallas_call(
        _make_attention_kernel(mask is not None),
        out_shape=jax.ShapeDtypeStruct((B, D), x.dtype),
        grid=grid,
        in_specs=in_specs,
        out_specs=pl.BlockSpec((blk_b, D), lambda i: (i, 0)),
        compiler_params=pltpu.CompilerParams(
            dimension_semantics=("parallel",),
            vmem_limit_bytes=_VMEM_LIMIT_BYTES,
        ),
    )(*args)


def attention_ref(x, weight, bias, mask=None):
    """Pure-JAX reference mirroring the PyTorch forward."""
    B, S, D = x.shape
    xf = x.astype(jnp.float32)
    eij = (xf.reshape(-1, D) @ weight.astype(jnp.float32).reshape(D, 1)).reshape(B, S)
    eij = jnp.tanh(eij + bias.astype(jnp.float32))
    a = jnp.exp(eij)
    if mask is not None:
        a = a * mask.astype(jnp.float32)
    a = a / (jnp.sum(a, axis=1, keepdims=True) + 1e-10)
    return jnp.sum(xf * a[:, :, None], axis=1).astype(x.dtype)


if __name__ == "__main__":
    key = jax.random.PRNGKey(0)
    B, S, D = 2, 8, 32   # (batch, step_dim, feature_dim)
    kx, kw, kb, km = jax.random.split(key, 4)

    x = jax.random.normal(kx, (B, S, D), dtype=jnp.float32)
    bound = (6.0 / D) ** 0.5   # kaiming_uniform-style bound for the (D, 1) weight
    weight = jax.random.uniform(kw, (D, 1), minval=-bound, maxval=bound,
                                dtype=jnp.float32)
    bias = 0.1 * jax.random.normal(kb, (S,), dtype=jnp.float32)
    mask = (jax.random.uniform(km, (B, S)) > 0.3).astype(jnp.float32)

    # mask=None path (PyTorch default)
    got = jax.block_until_ready(attention(x, weight, bias))
    want = attention_ref(x, weight, bias)
    ok = got.shape == (B, D) and bool(jnp.allclose(got, want, rtol=1e-4, atol=1e-4))

    # masked path
    got_m = jax.block_until_ready(attention(x, weight, bias, mask))
    want_m = attention_ref(x, weight, bias, mask)
    ok = ok and bool(jnp.allclose(got_m, want_m, rtol=1e-4, atol=1e-4))

    if ok:
        print("KERNEL_OK")
    else:
        print("MISMATCH: max abs err =",
              float(jnp.max(jnp.abs(got - want))), "(no mask)",
              float(jnp.max(jnp.abs(got_m - want_m))), "(mask)")
</pallas_src>

<mosaic_0001>
module attributes {stable_mosaic.version = 11 : i64} {
  func.func @kernel(%arg0: i32, %arg1: memref<2x8x32xf32, #tpu.memory_space<vmem>>, %arg2: memref<1x32xf32, #tpu.memory_space<vmem>>, %arg3: memref<1x8xf32, #tpu.memory_space<vmem>>, %arg4: memref<2x32xf32, #tpu.memory_space<vmem>>) attributes {dimension_semantics = [#tpu.dimension_semantics<parallel>], iteration_bounds = array<i64: 1>, scalar_prefetch = 0 : i64, scratch_operands = 0 : i64, tpu.core_type = #tpu.core_type<tc>, window_params = [{transform_indices = @transform_0, window_bounds = array<i64: 2, 8, 32>}, {pipeline_mode = #tpu.pipeline_mode<synchronous>, transform_indices = @transform_1, window_bounds = array<i64: 1, 32>}, {pipeline_mode = #tpu.pipeline_mode<synchronous>, transform_indices = @transform_2, window_bounds = array<i64: 1, 8>}, {transform_indices = @transform_3, window_bounds = array<i64: 2, 32>}]} {
    %c0 = arith.constant 0 : index
    %c0_0 = arith.constant 0 : index
    %c0_1 = arith.constant 0 : index
    %0 = vector.load %arg1[%c0, %c0_0, %c0_1] : memref<2x8x32xf32, #tpu.memory_space<vmem>>, vector<2x8x32xf32>
    %c0_2 = arith.constant 0 : index
    %c0_3 = arith.constant 0 : index
    %1 = vector.load %arg2[%c0_2, %c0_3] : memref<1x32xf32, #tpu.memory_space<vmem>>, vector<1x32xf32>
    %c0_4 = arith.constant 0 : index
    %c0_5 = arith.constant 0 : index
    %2 = vector.load %arg3[%c0_4, %c0_5] : memref<1x8xf32, #tpu.memory_space<vmem>>, vector<1x8xf32>
    %3 = vector.shape_cast %1 : vector<1x32xf32> to vector<1x1x32xf32>
    %4 = vector.broadcast %3 : vector<1x1x32xf32> to vector<2x8x32xf32>
    %5 = arith.mulf %0, %4 : vector<2x8x32xf32>
    %cst = arith.constant dense<0.000000e+00> : vector<2x8xf32>
    %6 = vector.multi_reduction <add>, %5, %cst [2] : vector<2x8x32xf32> to vector<2x8xf32>
    %7 = vector.broadcast %2 : vector<1x8xf32> to vector<2x8xf32>
    %8 = arith.addf %6, %7 : vector<2x8xf32>
    %9 = math.tanh %8 : vector<2x8xf32>
    %10 = math.exp %9 : vector<2x8xf32>
    %cst_6 = arith.constant dense<0.000000e+00> : vector<2xf32>
    %11 = vector.multi_reduction <add>, %10, %cst_6 [1] : vector<2x8xf32> to vector<2xf32>
    %12 = vector.shape_cast %11 : vector<2xf32> to vector<2x1xf32>
    %cst_7 = arith.constant 1.000000e-10 : f32
    %13 = vector.broadcast %cst_7 : f32 to vector<2x1xf32>
    %14 = arith.addf %12, %13 : vector<2x1xf32>
    %15 = tpu.reciprocal %14 {approx = true} : vector<2x1xf32> -> vector<2x1xf32>
    %16 = arith.mulf %14, %15 : vector<2x1xf32>
    %cst_8 = arith.constant 2.000000e+00 : f32
    %17 = vector.broadcast %cst_8 : f32 to vector<2x1xf32>
    %18 = arith.subf %17, %16 : vector<2x1xf32>
    %19 = arith.mulf %15, %18 : vector<2x1xf32>
    %20 = vector.broadcast %19 : vector<2x1xf32> to vector<2x8xf32>
    %21 = arith.mulf %10, %20 : vector<2x8xf32>
    %22 = vector.shape_cast %21 : vector<2x8xf32> to vector<2x8x1xf32>
    %23 = vector.broadcast %22 : vector<2x8x1xf32> to vector<2x8x32xf32>
    %24 = arith.mulf %0, %23 : vector<2x8x32xf32>
    %cst_9 = arith.constant dense<0.000000e+00> : vector<2x32xf32>
    %25 = vector.multi_reduction <add>, %24, %cst_9 [1] : vector<2x8x32xf32> to vector<2x32xf32>
    %c0_10 = arith.constant 0 : index
    %c0_11 = arith.constant 0 : index
    %26 = vector.load %arg4[%c0_10, %c0_11] : memref<2x32xf32, #tpu.memory_space<vmem>>, vector<2x32xf32>
    tpu.vector_store %arg4[%c0_10, %c0_11], %25 {strides = array<i32>} : memref<2x32xf32, #tpu.memory_space<vmem>>, vector<2x32xf32>,
    return
  }
  func.func @transform_0(%arg0: i32) -> (i32, i32, i32) {
    %c0_i32 = arith.constant 0 : i32
    %c0_i32_0 = arith.constant 0 : i32
    %c0_i32_1 = arith.constant 0 : i32
    return %arg0, %c0_i32, %c0_i32_0 : i32, i32, i32
  }
  func.func @transform_1(%arg0: i32) -> (i32, i32) {
    %c0_i32 = arith.constant 0 : i32
    %c0_i32_0 = arith.constant 0 : i32
    %c0_i32_1 = arith.constant 0 : i32
    return %c0_i32, %c0_i32_0 : i32, i32
  }
  func.func @transform_2(%arg0: i32) -> (i32, i32) {
    %c0_i32 = arith.constant 0 : i32
    %c0_i32_0 = arith.constant 0 : i32
    %c0_i32_1 = arith.constant 0 : i32
    return %c0_i32, %c0_i32_0 : i32, i32
  }
  func.func @transform_3(%arg0: i32) -> (i32, i32) {
    %c0_i32 = arith.constant 0 : i32
    %c0_i32_0 = arith.constant 0 : i32
    return %arg0, %c0_i32 : i32, i32
  }
}

</mosaic_0001>

<bundles_post_ra>
// kernel: attention.1
= control target key start
LH: loop header
LB: loop body
LE: loop exit
PB: predicated region body
PF: predicated region fallthrough
CT: control target
= control target key end

     0   :  { %8 = vsyncpa [#allocation3], 0  ;;  %s287_s0 = inlined_call_operand.hbm [shape: f32[2,8,32], index: 0, kind: input, shape index: {}]   ;;  %s288_s1 = inlined_call_operand.vmem [shape: f32[1,32], index: 1, kind: input, shape index: {}]   ;;  %s289_s2 = inlined_call_operand.vmem [shape: f32[1,8], index: 2, kind: input, shape index: {}]   ;;  %s290_s3 = inlined_call_operand.hbm [shape: f32[2,32], index: 3, kind: output, shape index: {}]  }
   0x1   :  { %9 = vsyncpa [#allocation4], 0  ;;  %s222_s12 = smov [#allocation2]   ;;  %s174_s16 = scalar_lea.hbm %s287_s0, 256 }
   0x2   :  { %s15_s13 = sshll.u32 %s222_s12, 4  ;;  %p175_p0 = scmp.ne.s32.totalorder %s287_s0, %s174_s16  ;;  %s16_s13 = int_to_ptr.vmem [resolvable:$true] %s15_s13 }
   0x3   :  { %p178_p1 = scmp.lt.u32.totalorder %s174_s16, %s287_s0 }
   0x5   :  { %p180_p2 = pnand %p178_p1, %p175_p0 }
   0x7   :  { %183 = shalt.err (!%p180_p2)
}
   0x8   :  { %s184_s21 = scalar_lea.vmem %s16_s13, 256  ;;  %p189_p4 = scmp.lt.s32.totalorder %s16_s13, %s16_s13 }
   0x9   :  { %p185_p3 = scmp.ne.s32.totalorder %s16_s13, %s184_s21  ;;  %p190_p5 = scmp.lt.s32.totalorder %s184_s21, %s184_s21 }
   0xb   :  { %p191_p6 = por %p190_p5, %p189_p4 }
   0xd   :  { %p192_p7 = pnand %p191_p6, %p185_p3 }
   0xf   :  { %195 = shalt.err (!%p192_p7)
}
  0x10   :  { %s223_s22 = smov 128   ;;  %s224_s23 = smov 8  }
  0x11   :  { %21 = dma.hbm_to_vmem [thread:$0]  %s287_s0, 256, %s16_s13, [#allocation3], %s223_s22, %s223_s22, %s224_s23  }
  0x12   :  { %218 = dma.done.wait [#allocation3], 256  }
  0x13   :  { %219 = vsyncadd [#allocation3], 4294967040  ;;  %v259_v0 = vld [vmem:[#allocation2] sm:$0xff]  ;;  %vm41_vm0 = vcmask 261120   ;;  %v30_v2 = vld [vmem:[#allocation2 + $0x8] sm:$0xff]  ;;  %v225_v8 = vmov 0   ;;  %v73_v20 = vlaneseq }
  0x14   :  { %v155_v1 = vld [vmem:[%s288_s1] ss:$0 sm:$0xff]  ;;  %162 = vset.pattern.permute.xlu1 %v225_v8  ;;  %163 = vset.pattern.permute.xlu0 %v225_v8  ;;  %vm83_vm1 = vcmask 1041409   ;;  %vm86_vm2 = vcmask 58368   ;;  %s226_s0 = smov [#allocation5]   ;;  %vm138_vm3 = vcmask 254976  }
  0x15   :  { %v39_v3 = vmul.f32 %v155_v1, %v259_v0  ;;  %v40_v4 = vmul.f32 %v155_v1, %v30_v2  ;;  %v156_v5 = vld [vmem:[%s289_s2] ss:$0 sm:$0xff]  ;;  %v74_v21 = vand.u32 127, %v73_v20  ;;  %v76_v22 = vshrl.u32 %v73_v20, 7  ;;  %s146_s1 = sshll.u32 %s226_s0, 4  ;;  %s147_s1 = int_to_ptr.vmem [resolvable:$true] %s146_s1 }
  0x16   :  { %54 = vbcast.lane.b32.xlu1 %v156_v5, 256  ;;  %s196_s2 = scalar_lea.vmem %s147_s1, 32  ;;  %p201_p9 = scmp.lt.s32.totalorder %s147_s1, %s147_s1 }
  0x17   :  { %v42_v6 = vsel %vm41_vm0, %v39_v3, 0.0  ;;  %v45_v7 = vsel %vm41_vm0, %v40_v4, 0.0  ;;  %v77_v23 = vsub.s32 %v74_v21, %v76_v22  ;;  %v102_v35 = vsub.s32 1, %v76_v22  ;;  %p197_p8 = scmp.ne.s32.totalorder %s147_s1, %s196_s2  ;;  %p202_p10 = scmp.lt.s32.totalorder %s196_s2, %s196_s2 }
  0x18   :  { %43 = vadd.xlane.f32.xlu0 %v42_v6  ;;  %v98_v36 = vsub.s32 0, %v76_v22 }
  0x19   :  { %p203_p11 = por %p202_p10, %p201_p9 }
  0x1b   :  { %p204_p12 = pnand %p203_p11, %p197_p8 }
  0x1c   :  { %46 = vadd.xlane.f32.xlu0 %v45_v7 }
  0x88   :  { %v55_v9 = vpop.permute.xlu1 %54 }
  0xa5   :  { %v44_v10 = vpop.xlane.xlu0 %43 }
  0xa6   :  { %v57_v11 = vadd.f32 %v55_v9, %v44_v10 }
  0xa8   :  { %164 = vtanh.f32 %v57_v11 }
  0xa9   :  { %v47_v12 = vpop.xlane.xlu0 %46 }
  0xaa   :  { %v58_v13 = vadd.f32 %v55_v9, %v47_v12 }
  0xac   :  { %166 = vtanh.f32 %v58_v13 }
  0xb2   :  { %v165_v14 = vpop.eup %164 }
  0xb3   :  { %v61_v15 = vmul.f32 1.442695, %v165_v14 }
  0xb5   :  { %168 = vpow2.f32 %v61_v15 }
  0xb6   :  { %v167_v16 = vpop.eup %166 }
  0xb7   :  { %v63_v17 = vmul.f32 1.442695, %v167_v16 }
  0xb9   :  { %170 = vpow2.f32 %v63_v17 }
  0xbf   :  { %v169_v18 = vpop.eup %168 }
  0xc0   :  { %68 = vperm.xlu1 %162, %v169_v18  }
  0xc3   :  { %v171_v19 = vpop.eup %170 }
  0xc4   :  { %71 = vperm.xlu0 %163, %v171_v19  }
 0x13f   :  { %v69_v24 = vpop.permute.xlu1 %68 }
 0x140   :  { %v78_v26 = vrot.slane %v69_v24, %v77_v23 }
 0x143   :  { %v72_v25 = vpop.permute.xlu0 %71 }
 0x144   :  { %v82_v27 = vrot.slane %v72_v25, %v77_v23 }
 0x146   :  { %v84_v28 = vsel %vm83_vm1, %v82_v27, %v78_v26 }
 0x147   :  { %v87_v29 = vsel %vm86_vm2, %v84_v28, 0.0 }
 0x148   :  { %88 = vadd.xlane.f32.xlu1 %v87_v29 }
 0x1d5   :  { %v89_v30 = vpop.xlane.xlu1 %88 }
 0x1d6   :  { %v90_v31 = vadd.f32 1e-10, %v89_v30 }
 0x1d8   :  { %172 = vrcp.f32 %v90_v31 }
 0x1e2   :  { %v173_v32 = vpop.eup %172 }
 0x1e3   :  { %v92_v33 = vmul.f32 %v173_v32, %v90_v31 }
 0x1e5   :  { %v93_v34 = vsub.f32 2.0, %v92_v33 }
 0x1e7   :  { %v94_v37 = vmul.f32 %v173_v32, %v93_v34 }
 0x1e9   :  { %v103_v38 = vrot.slane %v94_v37, %v102_v35  ;;  %v99_v39 = vrot.slane %v94_v37, %v98_v36 }
 0x1eb   :  { %v107_v40 = vmul.f32 %v171_v19, %v103_v38  ;;  %v106_v41 = vmul.f32 %v169_v18, %v99_v39 }
 0x1ed   :  { %115 = vperm.xlu0 %163, %v107_v40   ;;  %110 = vperm.xlu1 %162, %v106_v41  }
 0x26c   :  { %v116_v42 = vpop.permute.xlu0 %115  ;;  %v111_v43 = vpop.permute.xlu1 %110 }
 0x26d   :  { %v119_v44 = vmul.f32 %v116_v42, %v30_v2  ;;  %v118_v45 = vmul.f32 %v111_v43, %v259_v0 }
 0x26f   :  { %v127_v46 = vsel %vm41_vm0, %v119_v44, 0.0  ;;  %v120_v47 = vsel %vm41_vm0, %v118_v45, 0.0 }
 0x270   :  { %v128_v48 = vrot.slane %v127_v46, 4  ;;  %v121_v49 = vrot.slane %v120_v47, 4 }
 0x272   :  { %v129_v50 = vadd.f32 %v128_v48, %v127_v46  ;;  %v122_v51 = vadd.f32 %v121_v49, %v120_v47 }
 0x274   :  { %v130_v52 = vrot.slane %v129_v50, 2  ;;  %v123_v53 = vrot.slane %v122_v51, 2 }
 0x276   :  { %v131_v54 = vadd.f32 %v130_v52, %v129_v50  ;;  %v124_v55 = vadd.f32 %v123_v53, %v122_v51 }
 0x278   :  { %v132_v56 = vrot.slane %v131_v54, 1  ;;  %v125_v57 = vrot.slane %v124_v55, 1 }
 0x27a   :  { %v133_v58 = vadd.f32 %v132_v56, %v131_v54  ;;  %v126_v59 = vadd.f32 %v125_v57, %v124_v55 }
 0x27c   :  { %v136_v60 = vsel %vm83_vm1, %v133_v58, %v126_v59 }
 0x27d   :  { %139 = vst.msk [vmem:[#allocation5] sm:$0x3] %vm138_vm3, %v136_v60 }
 0x27e   :  { %207 = shalt.err (!%p204_p12)
}
 0x27f   :  { %s208_s5 = scalar_lea.hbm %s290_s3, 32 }
 0x280   :  { %p209_p13 = scmp.ne.s32.totalorder %s290_s3, %s208_s5  ;;  %p212_p0 = scmp.lt.u32.totalorder %s208_s5, %s290_s3 }
 0x282   :  { %p214_p1 = pnand %p212_p0, %p209_p13 }
 0x284   :  { %217 = shalt.err (!%p214_p1)
}
 0x285   :  { %149 = dma.vmem_to_hbm [thread:$0]  %s147_s1, 32, %s290_s3, [#allocation4]  }
 0x286   :  { %220 = dma.done.wait [#allocation4], 32  }
 0x287   :  { %221 = vsyncadd [#allocation4], 4294967264 }
 0x288   :  { %153 = vsyncpa [#allocation3], 1 }
 0x289   :  { %154 = vsyncpa [#allocation4], 1 }

</bundles_post_ra>
